<compile_context>
chip_gen: v7x
topology: tpu7x:2x2x1
jax: 0.10.0
libtpu: 0.0.40
codegen_flags: <defaults>
</compile_context>

<pallas_src>
import jax
import jax.numpy as jnp
from jax.experimental import pallas as pl
from jax.experimental.pallas import tpu as pltpu

LANE = 128          # lane width: pad feature dims to multiples of this
SUBLANE_BF16 = 16   # bf16 sublane packing: pad/tile batch in multiples of this
MAX_BATCH_TILE = 512


def _round_up(n: int, m: int) -> int:
    return ((n + m - 1) // m) * m


def decoder_kernel(x_ref, w1_ref, b1_ref, w2_ref, b2_ref, o_ref):
    # First linear (bf16 MXU, f32 accumulate) + bias + ReLU in f32.
    h = jnp.dot(x_ref[...], w1_ref[...], preferred_element_type=jnp.float32)
    h = jnp.maximum(h + b1_ref[...], 0.0)
    # Second linear: feed bf16 into the MXU, accumulate f32.
    y = jnp.dot(h.astype(w2_ref.dtype), w2_ref[...],
                preferred_element_type=jnp.float32)
    y = y + b2_ref[...]
    # Sigmoid on the EUP (exp + reciprocal), store f32.
    o_ref[...] = jax.nn.sigmoid(y).astype(o_ref.dtype)


def decoder_forward(x, w1, b1, w2, b2, *, block_b: int = MAX_BATCH_TILE):
    """x: (B, latent); w1: (latent, hidden); b1: (hidden,);
       w2: (hidden, output); b2: (output,). Returns (B, output) f32."""
    B, latent = x.shape
    hidden = w1.shape[1]
    out_dim = w2.shape[1]

    # Lane-dense padded feature dims.
    latent_p = _round_up(latent, LANE)
    hidden_p = _round_up(hidden, LANE)
    out_p = _round_up(out_dim, LANE)

    # Batch tile: at most block_b rows, aligned to bf16 sublane packing.
    tb = min(_round_up(block_b, SUBLANE_BF16), _round_up(B, SUBLANE_BF16))
    B_p = _round_up(B, tb)

    # Zero-pad (exact: padded lanes contribute 0 to the dots, bias pad is 0)
    # and cast matmul operands to bf16; biases stay f32.
    x_p = jnp.pad(x, ((0, B_p - B), (0, latent_p - latent))).astype(jnp.bfloat16)
    w1_p = jnp.pad(w1, ((0, latent_p - latent), (0, hidden_p - hidden))).astype(jnp.bfloat16)
    w2_p = jnp.pad(w2, ((0, hidden_p - hidden), (0, out_p - out_dim))).astype(jnp.bfloat16)
    b1_p = jnp.pad(b1, (0, hidden_p - hidden)).astype(jnp.float32).reshape(1, hidden_p)
    b2_p = jnp.pad(b2, (0, out_p - out_dim)).astype(jnp.float32).reshape(1, out_p)

    grid = (B_p // tb,)

    out_padded = pl.pallas_call(
        decoder_kernel,
        out_shape=jax.ShapeDtypeStruct((B_p, out_p), jnp.float32),
        grid_spec=pltpu.PrefetchScalarGridSpec(
            num_scalar_prefetch=0,
            grid=grid,
            in_specs=[
                # activations: march over batch tiles
                pl.BlockSpec((tb, latent_p), lambda i: (i, 0)),
                # weights / biases: constant index_map -> VMEM-resident
                pl.BlockSpec((latent_p, hidden_p), lambda i: (0, 0)),
                pl.BlockSpec((1, hidden_p), lambda i: (0, 0)),
                pl.BlockSpec((hidden_p, out_p), lambda i: (0, 0)),
                pl.BlockSpec((1, out_p), lambda i: (0, 0)),
            ],
            out_specs=pl.BlockSpec((tb, out_p), lambda i: (i, 0)),
        ),
        compiler_params=pltpu.CompilerParams(
            dimension_semantics=("parallel",),
        ),
    )(x_p, w1_p, b1_p, w2_p, b2_p)

    # Drop batch / lane padding outside the kernel.
    return out_padded[:B, :out_dim]


def init_params(key, latent_dim, hidden_dim, output_dim):
    """Deterministic synthetic parameters (PyTorch Linear shapes, pre-transposed)."""
    k1, k2, k3, k4 = jax.random.split(key, 4)
    # nn.Linear(latent, hidden): weight (hidden, latent) -> stored transposed (latent, hidden)
    w1 = jax.random.normal(k1, (latent_dim, hidden_dim), jnp.float32) * 0.1
    b1 = jax.random.normal(k2, (hidden_dim,), jnp.float32) * 0.1
    # nn.Linear(hidden, output): weight (output, hidden) -> stored transposed (hidden, output)
    w2 = jax.random.normal(k3, (hidden_dim, output_dim), jnp.float32) * 0.1
    b2 = jax.random.normal(k4, (output_dim,), jnp.float32) * 0.1
    return w1, b1, w2, b2


def reference_forward(x, w1, b1, w2, b2):
    h = jnp.maximum(x @ w1 + b1, 0.0)
    return jax.nn.sigmoid(h @ w2 + b2)


if __name__ == "__main__":
    latent_dim, hidden_dim, output_dim = 16, 32, 64
    batch = 8

    key = jax.random.PRNGKey(0)
    kx, kp = jax.random.split(key)
    x = jax.random.normal(kx, (batch, latent_dim), jnp.float32)
    w1, b1, w2, b2 = init_params(kp, latent_dim, hidden_dim, output_dim)

    out = decoder_forward(x, w1, b1, w2, b2)
    out = jax.block_until_ready(out)

    ref = reference_forward(x, w1, b1, w2, b2)
    assert out.shape == (batch, output_dim)
    # Tolerance relaxed vs the pure-f32 version: matmul operands are bf16 on
    # the MXU (f32 accumulation); sigmoid output in [0, 1] deviates well under 2e-2.
    assert jnp.allclose(out, ref, atol=2e-2, rtol=2e-2), "mismatch vs reference"

    print("KERNEL_OK")
</pallas_src>

<mosaic_0001>
module attributes {stable_mosaic.version = 11 : i64} {
  func.func @decoder_kernel(%arg0: i32, %arg1: memref<16x128xbf16, #tpu.memory_space<vmem>>, %arg2: memref<128x128xbf16, #tpu.memory_space<vmem>>, %arg3: memref<1x128xf32, #tpu.memory_space<vmem>>, %arg4: memref<128x128xbf16, #tpu.memory_space<vmem>>, %arg5: memref<1x128xf32, #tpu.memory_space<vmem>>, %arg6: memref<16x128xf32, #tpu.memory_space<vmem>>) attributes {dimension_semantics = [#tpu.dimension_semantics<parallel>], iteration_bounds = array<i64: 1>, scalar_prefetch = 0 : i64, scratch_operands = 0 : i64, tpu.core_type = #tpu.core_type<tc>, window_params = [{transform_indices = @transform_0, window_bounds = array<i64: 16, 128>}, {pipeline_mode = #tpu.pipeline_mode<synchronous>, transform_indices = @transform_1, window_bounds = array<i64: 128, 128>}, {pipeline_mode = #tpu.pipeline_mode<synchronous>, transform_indices = @transform_2, window_bounds = array<i64: 1, 128>}, {pipeline_mode = #tpu.pipeline_mode<synchronous>, transform_indices = @transform_3, window_bounds = array<i64: 128, 128>}, {pipeline_mode = #tpu.pipeline_mode<synchronous>, transform_indices = @transform_4, window_bounds = array<i64: 1, 128>}, {transform_indices = @transform_5, window_bounds = array<i64: 16, 128>}]} {
    %c0 = arith.constant 0 : index
    %c0_0 = arith.constant 0 : index
    %0 = vector.load %arg1[%c0, %c0_0] : memref<16x128xbf16, #tpu.memory_space<vmem>>, vector<16x128xbf16>
    %c0_1 = arith.constant 0 : index
    %c0_2 = arith.constant 0 : index
    %1 = vector.load %arg2[%c0_1, %c0_2] : memref<128x128xbf16, #tpu.memory_space<vmem>>, vector<128x128xbf16>
    %cst = arith.constant dense<0.000000e+00> : vector<16x128xf32>
    %2 = tpu.matmul %0, %1, %cst {dimension_numbers = #tpu.dot_dimension_numbers<[1], [0], [0], [1], [0, 0, 1, 1], [], []>} : vector<16x128xbf16>, vector<128x128xbf16>, vector<16x128xf32> -> vector<16x128xf32>
    %c0_3 = arith.constant 0 : index
    %c0_4 = arith.constant 0 : index
    %3 = vector.load %arg3[%c0_3, %c0_4] : memref<1x128xf32, #tpu.memory_space<vmem>>, vector<1x128xf32>
    %4 = vector.broadcast %3 : vector<1x128xf32> to vector<16x128xf32>
    %5 = arith.addf %2, %4 : vector<16x128xf32>
    %cst_5 = arith.constant 0.000000e+00 : f32
    %6 = vector.broadcast %cst_5 : f32 to vector<16x128xf32>
    %7 = arith.maximumf %5, %6 : vector<16x128xf32>
    %8 = arith.truncf %7 : vector<16x128xf32> to vector<16x128xbf16>
    %c0_6 = arith.constant 0 : index
    %c0_7 = arith.constant 0 : index
    %9 = vector.load %arg4[%c0_6, %c0_7] : memref<128x128xbf16, #tpu.memory_space<vmem>>, vector<128x128xbf16>
    %cst_8 = arith.constant dense<0.000000e+00> : vector<16x128xf32>
    %10 = tpu.matmul %8, %9, %cst_8 {dimension_numbers = #tpu.dot_dimension_numbers<[1], [0], [0], [1], [0, 0, 1, 1], [], []>} : vector<16x128xbf16>, vector<128x128xbf16>, vector<16x128xf32> -> vector<16x128xf32>
    %c0_9 = arith.constant 0 : index
    %c0_10 = arith.constant 0 : index
    %11 = vector.load %arg5[%c0_9, %c0_10] : memref<1x128xf32, #tpu.memory_space<vmem>>, vector<1x128xf32>
    %12 = vector.broadcast %11 : vector<1x128xf32> to vector<16x128xf32>
    %13 = arith.addf %10, %12 : vector<16x128xf32>
    %14 = arith.negf %13 : vector<16x128xf32>
    %15 = math.exp %14 : vector<16x128xf32>
    %cst_11 = arith.constant 1.000000e+00 : f32
    %16 = vector.broadcast %cst_11 : f32 to vector<16x128xf32>
    %17 = arith.addf %16, %15 : vector<16x128xf32>
    %18 = arith.divf %16, %17 : vector<16x128xf32>
    %c0_12 = arith.constant 0 : index
    %c0_13 = arith.constant 0 : index
    %19 = vector.load %arg6[%c0_12, %c0_13] : memref<16x128xf32, #tpu.memory_space<vmem>>, vector<16x128xf32>
    tpu.vector_store %arg6[%c0_12, %c0_13], %18 {strides = array<i32>} : memref<16x128xf32, #tpu.memory_space<vmem>>, vector<16x128xf32>,
    return
  }
  func.func @transform_0(%arg0: i32) -> (i32, i32) {
    %c0_i32 = arith.constant 0 : i32
    %c0_i32_0 = arith.constant 0 : i32
    return %arg0, %c0_i32 : i32, i32
  }
  func.func @transform_1(%arg0: i32) -> (i32, i32) {
    %c0_i32 = arith.constant 0 : i32
    %c0_i32_0 = arith.constant 0 : i32
    %c0_i32_1 = arith.constant 0 : i32
    return %c0_i32, %c0_i32_0 : i32, i32
  }
  func.func @transform_2(%arg0: i32) -> (i32, i32) {
    %c0_i32 = arith.constant 0 : i32
    %c0_i32_0 = arith.constant 0 : i32
    %c0_i32_1 = arith.constant 0 : i32
    return %c0_i32, %c0_i32_0 : i32, i32
  }
  func.func @transform_3(%arg0: i32) -> (i32, i32) {
    %c0_i32 = arith.constant 0 : i32
    %c0_i32_0 = arith.constant 0 : i32
    %c0_i32_1 = arith.constant 0 : i32
    return %c0_i32, %c0_i32_0 : i32, i32
  }
  func.func @transform_4(%arg0: i32) -> (i32, i32) {
    %c0_i32 = arith.constant 0 : i32
    %c0_i32_0 = arith.constant 0 : i32
    %c0_i32_1 = arith.constant 0 : i32
    return %c0_i32, %c0_i32_0 : i32, i32
  }
  func.func @transform_5(%arg0: i32) -> (i32, i32) {
    %c0_i32 = arith.constant 0 : i32
    %c0_i32_0 = arith.constant 0 : i32
    return %arg0, %c0_i32 : i32, i32
  }
}

</mosaic_0001>

<bundles_post_ra>
// kernel: tpu_custom_call.1
= control target key start
LH: loop header
LB: loop body
LE: loop exit
PB: predicated region body
PF: predicated region fallthrough
CT: control target
= control target key end

     0   :  { %10 = vsyncpa [#allocation3], 0  ;;  %s648_s0 = inlined_call_operand.hbm [shape: bf16[16,128], index: 0, kind: input, shape index: {}]   ;;  %s649_s1 = inlined_call_operand.hbm [shape: bf16[128,128], index: 1, kind: input, shape index: {}]   ;;  %s650_s2 = inlined_call_operand.vmem [shape: f32[1,128], index: 2, kind: input, shape index: {}]   ;;  %s651_s3 = inlined_call_operand.hbm [shape: bf16[128,128], index: 3, kind: input, shape index: {}]   ;;  %s652_s4 = inlined_call_operand.vmem [shape: f32[1,128], index: 4, kind: input, shape index: {}]   ;;  %s653_s5 = inlined_call_operand.hbm [shape: f32[16,128], index: 5, kind: output, shape index: {}]  }
   0x1   :  { %11 = vsyncpa [#allocation6], 0 }
   0x2   :  { %12 = vsyncpa [#allocation4], 0  ;;  %s538_s18 = smov [#allocation5]   ;;  %s539_s20 = smov [#allocation2]  }
   0x3   :  { %s30_s19 = sshll.u32 %s538_s18, 4  ;;  %s18_s21 = sshll.u32 %s539_s20, 4  ;;  %s31_s19 = int_to_ptr.vmem [resolvable:$true] %s30_s19  ;;  %s578_s21 = int_to_ptr.vmem [resolvable:$true] %s18_s21 }
   0x4   :  { %s444_s24 = scalar_lea.hbm %s649_s1, 1024 }
   0x5   :  { %p445_p0 = scmp.ne.s32.totalorder %s649_s1, %s444_s24  ;;  %p448_p1 = scmp.lt.u32.totalorder %s444_s24, %s649_s1 }
   0x7   :  { %p450_p2 = pnand %p448_p1, %p445_p0 }
   0x9   :  { %453 = shalt.err (!%p450_p2)
}
   0xa   :  { %s454_s29 = scalar_lea.vmem %s31_s19, 1024  ;;  %p459_p4 = scmp.lt.s32.totalorder %s31_s19, %s31_s19 }
   0xb   :  { %p455_p3 = scmp.ne.s32.totalorder %s31_s19, %s454_s29  ;;  %p460_p5 = scmp.lt.s32.totalorder %s454_s29, %s454_s29 }
   0xd   :  { %p461_p6 = por %p460_p5, %p459_p4 }
   0xf   :  { %p462_p7 = pnand %p461_p6, %p455_p3 }
  0x11   :  { %465 = shalt.err (!%p462_p7)
}
  0x12   :  { %s540_s30 = smov 64   ;;  %s541_s6 = smov 4  }
  0x13   :  { %36 = dma.hbm_to_vmem [thread:$0]  %s649_s1, 1024, %s31_s19, [#allocation6], %s540_s30, %s540_s30, %s541_s6  }
  0x14   :  { %s466_s11 = scalar_lea.hbm %s648_s0, 128 }
  0x15   :  { %p467_p8 = scmp.ne.s32.totalorder %s648_s0, %s466_s11  ;;  %p470_p9 = scmp.lt.u32.totalorder %s466_s11, %s648_s0 }
  0x17   :  { %p472_p10 = pnand %p470_p9, %p467_p8 }
  0x19   :  { %475 = shalt.err (!%p472_p10)
}
  0x1a   :  { %s476_s16 = scalar_lea.vmem %s578_s21, 128  ;;  %p481_p12 = scmp.lt.s32.totalorder %s578_s21, %s578_s21 }
  0x1b   :  { %p477_p11 = scmp.ne.s32.totalorder %s578_s21, %s476_s16  ;;  %p482_p13 = scmp.lt.s32.totalorder %s476_s16, %s476_s16 }
  0x1d   :  { %p483_p0 = por %p482_p13, %p481_p12 }
  0x1f   :  { %p484_p1 = pnand %p483_p0, %p477_p11 }
  0x21   :  { %487 = shalt.err (!%p484_p1)
}
  0x22   :  { %24 = dma.hbm_to_vmem [thread:$0]  %s648_s0, 128, %s578_s21, [#allocation3], %s540_s30, %s540_s30, %s541_s6  }
  0x23   :  { %s542_s18 = smov [#allocation7]   ;;  %s488_s23 = scalar_lea.hbm %s651_s3, 1024 }
  0x24   :  { %s44_s19 = sshll.u32 %s542_s18, 4  ;;  %p489_p2 = scmp.ne.s32.totalorder %s651_s3, %s488_s23  ;;  %s45_s19 = int_to_ptr.vmem [resolvable:$true] %s44_s19 }
  0x25   :  { %p492_p3 = scmp.lt.u32.totalorder %s488_s23, %s651_s3 }
  0x27   :  { %p494_p4 = pnand %p492_p3, %p489_p2 }
  0x29   :  { %497 = shalt.err (!%p494_p4)
}
  0x2a   :  { %s498_s28 = scalar_lea.vmem %s45_s19, 1024  ;;  %p503_p6 = scmp.lt.s32.totalorder %s45_s19, %s45_s19 }
  0x2b   :  { %p499_p5 = scmp.ne.s32.totalorder %s45_s19, %s498_s28  ;;  %p504_p7 = scmp.lt.s32.totalorder %s498_s28, %s498_s28 }
  0x2d   :  { %p505_p8 = por %p504_p7, %p503_p6 }
  0x2f   :  { %p506_p9 = pnand %p505_p8, %p499_p5 }
  0x31   :  { %509 = shalt.err (!%p506_p9)
}
  0x32   :  { %50 = dma.hbm_to_vmem [thread:$0]  %s651_s3, 1024, %s45_s19, [#allocation6], %s540_s30, %s540_s30, %s541_s6  }
  0x33   :  { %532 = dma.done.wait [#allocation3], 128  }
  0x34   :  { %533 = vsyncadd [#allocation3], 4294967168 }
  0x35   :  { %534 = dma.done.wait [#allocation6], 2048  }
  0x36   :  { %535 = vsyncadd [#allocation6], 4294965248  ;;  %v543_v0 = vmov 0.0   ;;  %vm544_vm0 = vmmov 0   ;;  %v419_v1 = vld [vmem:[#allocation5] sm:$0xff]   ;;  %v420_v2 = vld [vmem:[#allocation5 + $0x8] sm:$0xff]  }
  0x37   :  { %369 = vmatprep.subr.bf16.mxu0 %v543_v0  ;;  %385 = vmatprep.mubr.msk.bf16.mxu0 %vm544_vm0, %v543_v0  ;;  %v421_v3 = vld [vmem:[#allocation5 + $0x10] sm:$0xff]   ;;  %v428_v4 = vld [vmem:[#allocation7] sm:$0xff]   ;;  %v422_v5 = vld [vmem:[#allocation5 + $0x18] sm:$0xff]  }
  0x38   :  { %389 = vmatprep.subr.bf16.mxu1 %v543_v0  ;;  %405 = vmatprep.mubr.msk.bf16.mxu1 %vm544_vm0, %v543_v0  ;;  %v429_v6 = vld [vmem:[#allocation7 + $0x8] sm:$0xff]   ;;  %v423_v7 = vld [vmem:[#allocation5 + $0x20] sm:$0xff]   ;;  %v430_v8 = vld [vmem:[#allocation7 + $0x10] sm:$0xff]  }
  0x39   :  { %370 = vmatpush3.bf16.msra.mxu0 %v419_v1  ;;  %390 = vmatpush3.bf16.msra.mxu1 %v428_v4  ;;  %v424_v9 = vld [vmem:[#allocation5 + $0x28] sm:$0xff]   ;;  %v431_v10 = vld [vmem:[#allocation7 + $0x18] sm:$0xff]   ;;  %v425_v11 = vld [vmem:[#allocation5 + $0x30] sm:$0xff]  }
  0x3a   :  { %371 = vmatprep.subr.bf16.mxu0 %v543_v0  ;;  %391 = vmatprep.subr.bf16.mxu1 %v543_v0  ;;  %v432_v12 = vld [vmem:[#allocation7 + $0x20] sm:$0xff]   ;;  %v426_v13 = vld [vmem:[#allocation5 + $0x38] sm:$0xff]   ;;  %v433_v14 = vld [vmem:[#allocation7 + $0x28] sm:$0xff]  }
  0x3b   :  { %v427_v15 = vld [vmem:[#allocation2] sm:$0xff]   ;;  %v434_v16 = vld [vmem:[#allocation7 + $0x30] sm:$0xff]  }
  0x3c   :  { %v435_v17 = vld [vmem:[#allocation7 + $0x38] sm:$0xff]  }
  0x3d   :  { %372 = vmatpush3.bf16.msra.mxu0 %v420_v2  ;;  %392 = vmatpush3.bf16.msra.mxu1 %v429_v6  ;;  %v330_v18 = vld [vmem:[%s650_s2] ss:$0 sm:$0xff]  ;;  %s545_s2 = smov [#allocation8]  }
  0x3e   :  { %373 = vmatprep.subr.bf16.mxu0 %v543_v0  ;;  %393 = vmatprep.subr.bf16.mxu1 %v543_v0  ;;  %v340_v28 = vld [vmem:[%s652_s4] ss:$0 sm:$0xff]  ;;  %s317_s7 = sshll.u32 %s545_s2, 4  ;;  %s318_s7 = int_to_ptr.vmem [resolvable:$true] %s317_s7 }
  0x3f   :  { %s510_s4 = scalar_lea.vmem %s318_s7, 256  ;;  %p515_p11 = scmp.lt.s32.totalorder %s318_s7, %s318_s7 }
  0x40   :  { %p511_p10 = scmp.ne.s32.totalorder %s318_s7, %s510_s4  ;;  %p516_p12 = scmp.lt.s32.totalorder %s510_s4, %s510_s4 }
  0x41   :  { %374 = vmatpush3.bf16.msra.mxu0 %v421_v3  ;;  %394 = vmatpush3.bf16.msra.mxu1 %v430_v8 }
  0x42   :  { %375 = vmatprep.subr.bf16.mxu0 %v543_v0  ;;  %395 = vmatprep.subr.bf16.mxu1 %v543_v0  ;;  %p517_p13 = por %p516_p12, %p515_p11 }
  0x44   :  { %p518_p0 = pnand %p517_p13, %p511_p10 }
  0x45   :  { %376 = vmatpush3.bf16.msra.mxu0 %v422_v5  ;;  %396 = vmatpush3.bf16.msra.mxu1 %v431_v10 }
  0x46   :  { %377 = vmatprep.subr.bf16.mxu0 %v543_v0  ;;  %397 = vmatprep.subr.bf16.mxu1 %v543_v0 }
  0x49   :  { %378 = vmatpush3.bf16.msra.mxu0 %v423_v7  ;;  %398 = vmatpush3.bf16.msra.mxu1 %v432_v12 }
  0x4a   :  { %379 = vmatprep.subr.bf16.mxu0 %v543_v0  ;;  %399 = vmatprep.subr.bf16.mxu1 %v543_v0 }
  0x4d   :  { %380 = vmatpush3.bf16.msra.mxu0 %v424_v9  ;;  %400 = vmatpush3.bf16.msra.mxu1 %v433_v14 }
  0x4e   :  { %381 = vmatprep.subr.bf16.mxu0 %v543_v0  ;;  %401 = vmatprep.subr.bf16.mxu1 %v543_v0 }
  0x51   :  { %382 = vmatpush3.bf16.msra.mxu0 %v425_v11  ;;  %402 = vmatpush3.bf16.msra.mxu1 %v434_v16 }
  0x52   :  { %383 = vmatprep.subr.bf16.mxu0 %v543_v0  ;;  %403 = vmatprep.subr.bf16.mxu1 %v543_v0 }
  0x55   :  { %384 = vmatpush3.bf16.msra.mxu0 %v426_v13  ;;  %404 = vmatpush3.bf16.msra.mxu1 %v435_v17 }
  0x58   :  { %386 = vmatmul.mubr.bf16.vlgmr.msra.gmra.mrb[0].mxu0 %v427_v15 }
 0x12b   :  { %v176_v19 = vpop.f32.mrb[0].mxu0 }
 0x12c   :  { %v177_v20 = vadd.f32 %v330_v18, %v176_v19  ;;  %v387_v21 = vpop.f32.mrb[1].mxu0 }
 0x12d   :  { %v179_v22 = vpop.f32.mrb[2].mxu0 }
 0x12e   :  { %v180_v23 = vadd.f32 %v330_v18, %v179_v22  ;;  %v388_v24 = vpop.f32.mrb[3].mxu0  ;;  %v183_v25 = vmax.f32 %v177_v20, 0.0 }
 0x130   :  { %v184_v26 = vmax.f32 %v180_v23, 0.0 }
 0x132   :  { %v185_v27 = vpack.c.bf16 %v184_v26, %v183_v25 }
 0x134   :  { %406 = vmatmul.mubr.bf16.vlgmr.msra.gmra.mrb[0].mxu1 %v185_v27 }
 0x207   :  { %v291_v29 = vpop.f32.mrb[0].mxu1 }
 0x208   :  { %v292_v30 = vadd.f32 %v340_v28, %v291_v29  ;;  %v407_v31 = vpop.f32.mrb[1].mxu1 }
 0x209   :  { %v294_v32 = vpop.f32.mrb[2].mxu1 }
 0x20a   :  { %v349_v33 = vmul.f32 -1.442695, %v292_v30  ;;  %v295_v34 = vadd.f32 %v340_v28, %v294_v32  ;;  %v408_v35 = vpop.f32.mrb[3].mxu1 }
 0x20c   :  { %436 = vpow2.f32 %v349_v33  ;;  %v350_v36 = vmul.f32 -1.442695, %v295_v34 }
 0x20e   :  { %438 = vpow2.f32 %v350_v36 }
 0x216   :  { %v437_v37 = vpop.eup %436 }
 0x217   :  { %v304_v38 = vadd.f32 1.0, %v437_v37 }
 0x218   :  { %v439_v39 = vpop.eup %438 }
 0x219   :  { %440 = vrcp.f32 %v304_v38  ;;  %v305_v40 = vadd.f32 1.0, %v439_v39 }
 0x21b   :  { %442 = vrcp.f32 %v305_v40 }
 0x223   :  { %v441_v41 = vpop.eup %440 }
 0x224   :  { %310 = vst [vmem:[#allocation8] sm:$0xff] %v441_v41 }
 0x225   :  { %v443_v42 = vpop.eup %442 }
 0x226   :  { %311 = vst [vmem:[#allocation8 + $0x8] sm:$0xff] %v443_v42 }
 0x227   :  { %521 = shalt.err (!%p518_p0)
}
 0x228   :  { %s522_s10 = scalar_lea.hbm %s653_s5, 256 }
 0x229   :  { %p523_p1 = scmp.ne.s32.totalorder %s653_s5, %s522_s10  ;;  %p526_p2 = scmp.lt.u32.totalorder %s522_s10, %s653_s5 }
 0x22b   :  { %p528_p3 = pnand %p526_p2, %p523_p1 }
 0x22d   :  { %531 = shalt.err (!%p528_p3)
}
 0x22e   :  { %s546_s15 = smov 128   ;;  %s547_s16 = smov 8  }
 0x22f   :  { %323 = dma.vmem_to_hbm [thread:$0]  %s318_s7, 256, %s653_s5, [#allocation4], %s546_s15, %s546_s15, %s547_s16  }
 0x230   :  { %536 = dma.done.wait [#allocation4], 256  }
 0x231   :  { %537 = vsyncadd [#allocation4], 4294967040 }
 0x232   :  { %327 = vsyncpa [#allocation3], 1 }
 0x233   :  { %328 = vsyncpa [#allocation6], 1 }
 0x234   :  { %329 = vsyncpa [#allocation4], 1 }

</bundles_post_ra>
